<compile_context>
chip_gen: v7x
topology: tpu7x:2x2x1
jax: 0.10.0
libtpu: 0.0.40
codegen_flags: <defaults>
</compile_context>

<pallas_src>
import functools

import jax
import jax.numpy as jnp
from jax.experimental import pallas as pl
from jax.experimental.pallas import tpu as pltpu


def _ce_partial_kernel(x_ref, t_ref, out_ref, *, tile_n, n_classes, n_true):
    """Writes this tile's sum of per-row cross-entropies into out_ref."""
    i = pl.program_id(0)

    logits = x_ref[...].astype(jnp.float32)            # (tile_n, C) f32
    tgt = t_ref[...]                                    # (tile_n, 1) int32

    # (1, C) lane iota broadcast against (tile_n, 1) targets -> one-hot mask
    col = jax.lax.broadcasted_iota(jnp.int32, (1, n_classes), 1)
    onehot = col == tgt                                 # (tile_n, C) bool

    # numerically stable logsumexp: row max on the XLU, lane sums on the MXU
    m = jnp.max(logits, axis=-1, keepdims=True)         # (tile_n, 1)
    p = jnp.exp(logits - m)                              # EUP
    ones_mat = jnp.ones((n_classes, 128), dtype=jnp.float32)
    sum_exp = jnp.dot(p, ones_mat,
                      preferred_element_type=jnp.float32)[:, 0:1]   # MXU
    lse = m + jnp.log(sum_exp)                           # (tile_n, 1)

    # target logit per row: masked logits summed over lanes, also on the MXU
    tgt_logit = jnp.dot(jnp.where(onehot, logits, 0.0), ones_mat,
                        preferred_element_type=jnp.float32)[:, 0:1]

    ce = lse - tgt_logit                                 # (tile_n, 1)

    # Mask rows past the true batch size (the last tile may run off the end
    # of the array and contain garbage).  Keep this AFTER the ce computation:
    # garbage rows may produce Inf/NaN intermediates; the select zeroes them.
    row = jax.lax.broadcasted_iota(jnp.int32, (tile_n, 1), 0) + i * tile_n
    ce = jnp.where(row < n_true, ce, 0.0)

    # one lane-dense (1, 1, 128) splat per tile -> unmasked vst, tiny writeback
    out_ref[...] = jnp.full((1, 1, 128), jnp.sum(ce), dtype=jnp.float32)


def focal_loss(inputs: jax.Array, targets: jax.Array, gamma: float = 2.0,
               vmem_budget_bytes: int = 16 * 1024 * 1024,
               payload_target_bytes: int = 4 * 1024 * 1024) -> jax.Array:
    """inputs: (N, C) float logits; targets: (N,) int class ids. Returns scalar."""
    n, c = inputs.shape
    itemsize = jnp.dtype(inputs.dtype).itemsize
    row_align = {4: 8, 2: 16, 1: 32}.get(itemsize, 8)

    # --- tile sizing by bytes (VMEM cost model, not a fixed row count) -----
    # Narrow class dims are padded to 128 lanes inside VMEM, so the physical
    # per-row cost is based on round_up(C, 128):
    #   2 pipeline buffers of the input block
    # + ~4 full-width f32 temporaries (upcast, exp, onehot/where)
    # + ~6 column-shaped (row, 1)/(row, 128) f32 values (m, lse, ce, dots, ...)
    c_phys = ((c + 127) // 128) * 128
    per_row = 2 * c_phys * itemsize + 4 * c_phys * 4 + 6 * 128 * 4
    rows_vmem = max(row_align, vmem_budget_bytes // per_row)
    rows_payload = max(row_align, payload_target_bytes // (c * itemsize))
    tile_n = min(rows_vmem, rows_payload)
    tile_n = max(row_align, (tile_n // row_align) * row_align)

    n_aligned = ((n + row_align - 1) // row_align) * row_align
    tile_n = min(tile_n, n_aligned)

    # v7x has 2 TensorCores: prefer >= 2 grid steps over one mega-tile so the
    # "parallel" grid axis can be sharded across them (no-op on v5e/v6e).
    if pl.cdiv(n, tile_n) < 2 and tile_n > row_align:
        half = (tile_n + 1) // 2
        tile_n = max(row_align, ((half + row_align - 1) // row_align) * row_align)

    num_tiles = pl.cdiv(n, tile_n)

    # targets as a (N, 1) int32 VMEM column (no SMEM padding blowup, no pad)
    t = targets.astype(jnp.int32).reshape(n, 1)

    kernel = functools.partial(
        _ce_partial_kernel, tile_n=tile_n, n_classes=c, n_true=n)

    partials = pl.pallas_call(
        kernel,
        out_shape=jax.ShapeDtypeStruct((num_tiles, 1, 128), jnp.float32),
        grid=(num_tiles,),
        in_specs=[
            # logits: (tile_n, C) streamed over the batch dim; last dim equals
            # the full array dim so no class padding is needed
            pl.BlockSpec((tile_n, c), lambda i: (i, 0)),
            pl.BlockSpec((tile_n, 1), lambda i: (i, 0)),
        ],
        out_specs=pl.BlockSpec((1, 1, 128), lambda i: (i, 0, 0)),
        compiler_params=pltpu.CompilerParams(
            dimension_semantics=("parallel",),
            vmem_limit_bytes=40 * 1024 * 1024,
        ),
        cost_estimate=pl.CostEstimate(
            flops=8 * n * c + 2 * 2 * n * c * 128,      # VPU + two MXU dots
            transcendentals=n * c + n,                   # exp + log
            bytes_accessed=n * c * itemsize + n * 4 + num_tiles * 512,
        ),
    )(inputs, t)

    # reduce the per-tile partial sums and apply the focal transform once here
    ce_mean = jnp.sum(partials[:, 0, 0]) / jnp.float32(n)
    pt = jnp.exp(-ce_mean)
    one_minus_pt = 1.0 - pt
    g = float(gamma)
    if g == 2.0:
        mod = jnp.square(one_minus_pt)            # avoid pow -> exp(log(x))
    elif g.is_integer():
        mod = jax.lax.integer_pow(one_minus_pt, int(g))
    else:
        mod = one_minus_pt ** g
    return mod * ce_mean


def focal_loss_ref(inputs, targets, gamma=2.0):
    # pure-JAX reference for sanity checking
    lse = jax.scipy.special.logsumexp(inputs, axis=-1)
    tgt_logit = jnp.take_along_axis(inputs, targets[:, None], axis=-1)[:, 0]
    ce = jnp.mean(lse - tgt_logit)
    pt = jnp.exp(-ce)
    return (1.0 - pt) ** gamma * ce


if __name__ == "__main__":
    key = jax.random.PRNGKey(0)
    k1, k2, k3, k4 = jax.random.split(key, 4)

    # small shape consistent with the module: batch=8 logits over 16 classes
    N, C = 8, 16
    inputs = jax.random.normal(k1, (N, C), dtype=jnp.float32)
    targets = jax.random.randint(k2, (N,), 0, C, dtype=jnp.int32)

    out = jax.block_until_ready(focal_loss(inputs, targets, gamma=2.0))
    ref = focal_loss_ref(inputs, targets, gamma=2.0)
    assert jnp.allclose(out, ref, rtol=1e-5, atol=1e-5), (out, ref)

    # multi-tile path with a ragged last tile: exercises the in-kernel row mask
    N2, C2 = 300, 16
    inputs2 = jax.random.normal(k3, (N2, C2), dtype=jnp.float32)
    targets2 = jax.random.randint(k4, (N2,), 0, C2, dtype=jnp.int32)
    out2 = jax.block_until_ready(focal_loss(inputs2, targets2, gamma=2.0))
    ref2 = focal_loss_ref(inputs2, targets2, gamma=2.0)
    assert jnp.allclose(out2, ref2, rtol=1e-5, atol=1e-5), (out2, ref2)

    print("KERNEL_OK")
</pallas_src>

<mosaic_0001>
module attributes {stable_mosaic.version = 11 : i64} {
  func.func @_ce_partial_kernel(%arg0: i32, %arg1: memref<8x16xf32, #tpu.memory_space<vmem>>, %arg2: memref<8x1xi32, #tpu.memory_space<vmem>>, %arg3: memref<1x1x128xf32, #tpu.memory_space<vmem>>) attributes {dimension_semantics = [#tpu.dimension_semantics<parallel>], iteration_bounds = array<i64: 1>, scalar_prefetch = 0 : i64, scratch_operands = 0 : i64, tpu.core_type = #tpu.core_type<tc>, window_params = [{transform_indices = @transform_0, window_bounds = array<i64: 8, 16>}, {transform_indices = @transform_1, window_bounds = array<i64: 8, 1>}, {transform_indices = @transform_2, window_bounds = array<i64: 1, 1, 128>}]} {
    %c0 = arith.constant 0 : index
    %c0_0 = arith.constant 0 : index
    %0 = vector.load %arg1[%c0, %c0_0] : memref<8x16xf32, #tpu.memory_space<vmem>>, vector<8x16xf32>
    %c0_1 = arith.constant 0 : index
    %c0_2 = arith.constant 0 : index
    %1 = vector.load %arg2[%c0_1, %c0_2] : memref<8x1xi32, #tpu.memory_space<vmem>>, vector<8x1xi32>
    %2 = tpu.iota {dimensions = array<i32: 1>} : vector<1x16xi32>
    %3 = vector.broadcast %2 : vector<1x16xi32> to vector<8x16xi32>
    %4 = vector.broadcast %1 : vector<8x1xi32> to vector<8x16xi32>
    %5 = arith.cmpi eq, %3, %4 : vector<8x16xi32>
    %cst = arith.constant dense<0xFF800000> : vector<8xf32>
    %6 = vector.multi_reduction <maximumf>, %0, %cst [1] : vector<8x16xf32> to vector<8xf32>
    %7 = vector.shape_cast %6 : vector<8xf32> to vector<8x1xf32>
    %8 = vector.broadcast %7 : vector<8x1xf32> to vector<8x16xf32>
    %9 = arith.subf %0, %8 : vector<8x16xf32>
    %10 = math.exp %9 : vector<8x16xf32>
    %cst_3 = arith.constant 1.000000e+00 : f32
    %11 = vector.broadcast %cst_3 : f32 to vector<16x128xf32>
    %cst_4 = arith.constant dense<0.000000e+00> : vector<8x128xf32>
    %12 = tpu.matmul %10, %11, %cst_4 {dimension_numbers = #tpu.dot_dimension_numbers<[1], [0], [0], [1], [0, 0, 1, 1], [], []>} : vector<8x16xf32>, vector<16x128xf32>, vector<8x128xf32> -> vector<8x128xf32>
    %13 = vector.extract_strided_slice %12 {offsets = [0, 0], sizes = [8, 1], strides = [1, 1]} : vector<8x128xf32> to vector<8x1xf32>
    %14 = math.log %13 : vector<8x1xf32>
    %15 = arith.addf %7, %14 : vector<8x1xf32>
    %cst_5 = arith.constant 0.000000e+00 : f32
    %16 = vector.broadcast %cst_5 : f32 to vector<8x16xf32>
    %17 = arith.select %5, %0, %16 : vector<8x16xi1>, vector<8x16xf32>
    %cst_6 = arith.constant dense<0.000000e+00> : vector<8x128xf32>
    %18 = tpu.matmul %17, %11, %cst_6 {dimension_numbers = #tpu.dot_dimension_numbers<[1], [0], [0], [1], [0, 0, 1, 1], [], []>} : vector<8x16xf32>, vector<16x128xf32>, vector<8x128xf32> -> vector<8x128xf32>
    %19 = vector.extract_strided_slice %18 {offsets = [0, 0], sizes = [8, 1], strides = [1, 1]} : vector<8x128xf32> to vector<8x1xf32>
    %20 = arith.subf %15, %19 : vector<8x1xf32>
    %21 = tpu.iota {dimensions = array<i32: 0>} : vector<8x1xi32>
    %c8_i32 = arith.constant 8 : i32
    %22 = arith.muli %arg0, %c8_i32 : i32
    %23 = vector.broadcast %22 : i32 to vector<8x1xi32>
    %24 = arith.addi %21, %23 : vector<8x1xi32>
    %c8_i32_7 = arith.constant 8 : i32
    %25 = vector.broadcast %c8_i32_7 : i32 to vector<8x1xi32>
    %26 = arith.cmpi slt, %24, %25 : vector<8x1xi32>
    %cst_8 = arith.constant 0.000000e+00 : f32
    %27 = vector.broadcast %cst_8 : f32 to vector<8x1xf32>
    %28 = arith.select %26, %20, %27 : vector<8x1xi1>, vector<8x1xf32>
    %29 = vector.shape_cast %28 : vector<8x1xf32> to vector<1x8x1xf32>
    %cst_9 = arith.constant dense<0.000000e+00> : vector<1xf32>
    %30 = vector.multi_reduction <add>, %29, %cst_9 [1, 2] : vector<1x8x1xf32> to vector<1xf32>
    %31 = vector.shape_cast %30 : vector<1xf32> to vector<1x1x1xf32>
    %32 = vector.extract %31[0, 0, 0] : f32 from vector<1x1x1xf32>
    %33 = vector.broadcast %32 : f32 to vector<1x1x128xf32>
    %c0_10 = arith.constant 0 : index
    %c0_11 = arith.constant 0 : index
    %c0_12 = arith.constant 0 : index
    %34 = vector.load %arg3[%c0_10, %c0_11, %c0_12] : memref<1x1x128xf32, #tpu.memory_space<vmem>>, vector<1x1x128xf32>
    tpu.vector_store %arg3[%c0_10, %c0_11, %c0_12], %33 {strides = array<i32>} : memref<1x1x128xf32, #tpu.memory_space<vmem>>, vector<1x1x128xf32>,
    return
  }
  func.func @transform_0(%arg0: i32) -> (i32, i32) {
    %c0_i32 = arith.constant 0 : i32
    %c0_i32_0 = arith.constant 0 : i32
    return %arg0, %c0_i32 : i32, i32
  }
  func.func @transform_1(%arg0: i32) -> (i32, i32) {
    %c0_i32 = arith.constant 0 : i32
    %c0_i32_0 = arith.constant 0 : i32
    return %arg0, %c0_i32 : i32, i32
  }
  func.func @transform_2(%arg0: i32) -> (i32, i32, i32) {
    %c0_i32 = arith.constant 0 : i32
    %c0_i32_0 = arith.constant 0 : i32
    %c0_i32_1 = arith.constant 0 : i32
    return %arg0, %c0_i32, %c0_i32_0 : i32, i32, i32
  }
}

</mosaic_0001>

<bundles_post_ra>
// kernel: tpu_custom_call.1
= control target key start
LH: loop header
LB: loop body
LE: loop exit
PB: predicated region body
PF: predicated region fallthrough
CT: control target
= control target key end

     0   :  { %vm20_vm0 = vcmask 130048   ;;  %s317_s0 = inlined_call_operand.vmem [shape: f32[8,16], index: 0, kind: input, shape index: {}]   ;;  %s318_s1 = inlined_call_operand.vmem [shape: s32[8,1], index: 1, kind: input, shape index: {}]   ;;  %s319_s2 = inlined_call_operand.hbm [shape: f32[1,1,128], index: 2, kind: output, shape index: {}]  }
   0x1   :  { %v12_v0 = vld [vmem:[%s317_s0] sm:$0xff] }
   0x2   :  { %7 = vsyncpa [#allocation3], 0  ;;  %v21_v1 = vsel %vm20_vm0, %v12_v0, -inf  ;;  %v275_v2 = vmov 0   ;;  %v13_v3 = vld [vmem:[%s318_s1] sm:$0xff]  ;;  %v276_v4 = vmov 0.0|0.0   ;;  %v14_v9 = vlaneseq }
   0x3   :  { %246 = vset.pattern.permute.xlu0 %v275_v2  ;;  %234 = vmatprep.subr.bf16.mxu0 %v276_v4  ;;  %vm277_vm1 = vmmov 0   ;;  %v278_v5 = vmov 0.0   ;;  %v279_v6 = vmov 1.0|1.0   ;;  %vm185_vm3 = vcmask 7168   ;;  %s280_s0 = smov [#allocation2]  }
   0x4   :  { %22 = vmax.xlane.f32.xlu0 %v21_v1  ;;  %224 = vmatprep.mubr.msk.f32.mxu0 %vm277_vm1, %v278_v5  ;;  %v15_v11 = vand.u32 127, %v14_v9  ;;  %s204_s1 = sshll.u32 %s280_s0, 4  ;;  %s205_s1 = int_to_ptr.vmem [resolvable:$true] %s204_s1 }
   0x5   :  { %235 = vmatpush3.bf16.msra.mxu0 %v279_v6  ;;  %236 = vmatprep.subr.bf16.mxu1 %v276_v4  ;;  %s251_s14 = scalar_lea.vmem %s205_s1, 16  ;;  %s255_s15 = scalar_lea.vmem %s205_s1, 32 }
   0x6   :  { %237 = vmatpush3.bf16.msra.mxu1 %v279_v6  ;;  %231 = vmatprep.mubr.msk.f32.mxu1 %vm277_vm1, %v278_v5  ;;  %p252_p0 = scmp.ne.s32.totalorder %s205_s1, %s251_s14  ;;  %p256_p1 = scmp.lt.s32.totalorder %s205_s1, %s205_s1 }
   0x7   :  { %p257_p2 = scmp.lt.s32.totalorder %s255_s15, %s251_s14 }
   0x9   :  { %p258_p3 = por %p257_p2, %p256_p1 }
   0xb   :  { %p259_p4 = pnand %p258_p3, %p252_p0 }
  0x1a   :  { %17 = vperm.xlu0 %246, %v13_v3  }
  0x91   :  { %v23_v7 = vpop.xlane.xlu0 %22 }
  0x92   :  { %v24_v8 = vsub.f32 %v12_v0, %v23_v7 }
  0x94   :  { %v25_v10 = vmul.f32 1.442695, %v24_v8 }
  0x96   :  { %247 = vpow2.f32 %v25_v10 }
  0x99   :  { %v18_v12 = vpop.permute.xlu0 %17 }
  0x9a   :  { %vm19_vm2 = vcmp.eq.s32.totalorder %v15_v11, %v18_v12 }
  0x9b   :  { %v103_v13 = vsel %vm19_vm2, %v12_v0, 0.0 }
  0x9c   :  { %232 = vmatmul.mubr.msk.f32.vlgmr.msra.gmra.mrb[0].mxu1 %vm20_vm0, %v103_v13 }
  0xa0   :  { %v248_v14 = vpop.eup %247 }
  0xa1   :  { %225 = vmatmul.mubr.msk.f32.vlgmr.msra.gmra.mrb[0].mxu0 %vm20_vm0, %v248_v14 }
 0x16f   :  { %v173_v15 = vpop.f32.mrb[0].mxu1 }
 0x170   :  { %v233_v16 = vpop.f32.mrb[1].mxu1 }
 0x174   :  { %v96_v17 = vpop.f32.mrb[0].mxu0 }
 0x175   :  { %249 = vlog2.f32 %v96_v17  ;;  %v226_v18 = vpop.f32.mrb[1].mxu0 }
 0x17f   :  { %v250_v19 = vpop.eup %249 }
 0x180   :  { %v101_v20 = vmul.f32 0.6931472, %v250_v19 }
 0x182   :  { %v102_v21 = vadd.f32 %v101_v20, %v23_v7 }
 0x184   :  { %v177_v22 = vsub.f32 %v102_v21, %v173_v15 }
 0x186   :  { %v186_v23 = vsel %vm185_vm3, %v177_v22, 0.0 }
 0x187   :  { %187 = vadd.xlane.f32.xlu1 %v186_v23 }
 0x214   :  { %v188_v24 = vpop.xlane.xlu1 %187 }
 0x215   :  { %v189_v25 = vrot.slane %v188_v24, 4 }
 0x217   :  { %v190_v26 = vadd.f32 %v189_v25, %v188_v24 }
 0x219   :  { %v191_v27 = vrot.slane %v190_v26, 2 }
 0x21b   :  { %v192_v28 = vadd.f32 %v191_v27, %v190_v26 }
 0x21d   :  { %v193_v29 = vrot.slane %v192_v28, 1 }
 0x21f   :  { %v194_v30 = vadd.f32 %v193_v29, %v192_v28 }
 0x221   :  { %238 = vpush %v194_v30 }
 0x252   :  { %s239_s13 = spop %238 }
 0x253   :  { %v196_v31 = vstv %s239_s13 }
 0x254   :  { %197 = vst [vmem:[#allocation2] sm:$0x1] %v196_v31 }
 0x255   :  { %262 = shalt.err (!%p259_p4)
}
 0x256   :  { %s263_s18 = scalar_lea.hbm %s319_s2, 16 }
 0x257   :  { %p264_p5 = scmp.ne.s32.totalorder %s319_s2, %s263_s18  ;;  %p267_p6 = scmp.lt.u32.totalorder %s263_s18, %s319_s2 }
 0x259   :  { %p269_p7 = pnand %p267_p6, %p264_p5 }
 0x25b   :  { %272 = shalt.err (!%p269_p7)
}
 0x25c   :  { %207 = dma.vmem_to_hbm [thread:$0]  %s205_s1, 16, %s319_s2, [#allocation3]  }
 0x25d   :  { %273 = dma.done.wait [#allocation3], 16  }
 0x25e   :  { %274 = vsyncadd [#allocation3], 4294967280 }
 0x25f   :  { %211 = vsyncpa [#allocation3], 1 }

</bundles_post_ra>
